<compile_context>
chip_gen: v7x
topology: tpu7x:2x2x1
jax: 0.10.0
libtpu: 0.0.40
codegen_flags: <defaults>
</compile_context>

<pallas_src>
import functools

import jax
import jax.numpy as jnp
from jax.experimental import pallas as pl
from jax.experimental.pallas import tpu as pltpu

_LANES = 128
_SUBLANES = 8
_DEFAULT_MAX_TILE_ROWS = 4096   # 4096*128*4B = 2 MiB f32/block, 4 MiB double-buffered
_SMALL_N_THRESHOLD = 1024       # below this, plain jnp beats a kernel launch


def _temp_reg_sum_kernel(x_ref, target_ref, out_ref, acc_ref, *,
                         tile_rows, valid_rows_last, mask_last):
    # x_ref     : [tile_rows, 128] input block (original dtype) in VMEM
    # target_ref: [1, 1] f32 in SMEM (target temperature)
    # out_ref   : [1, 1] f32 in SMEM (un-normalized sum of squared diffs)
    # acc_ref   : [8, 128] f32 VMEM vreg-shaped accumulator (resident)
    i = pl.program_id(0)
    last = pl.num_programs(0) - 1

    @pl.when(i == 0)
    def _init():
        acc_ref[...] = jnp.zeros_like(acc_ref)

    # Cast in-kernel (keeps HBM traffic at the input dtype's width).
    x = x_ref[...].astype(jnp.float32)
    d = x - target_ref[0, 0]
    sq = d * d

    def _accumulate(vals):
        # Layout-preserving view (R,128) -> (R/8, 8, 128); sum over the
        # major axis is pure vreg adds on the VPU, accumulator stays (8,128).
        acc_ref[...] += vals.reshape(tile_rows // _SUBLANES, _SUBLANES,
                                     _LANES).sum(axis=0)

    if mask_last:
        # Only the last block can run past the valid rows (OOB reads are
        # garbage); every other block takes the unmasked path.
        @pl.when(i < last)
        def _body():
            _accumulate(sq)

        @pl.when(i == last)
        def _tail():
            row_ids = jax.lax.broadcasted_iota(jnp.int32, sq.shape, 0)
            _accumulate(jnp.where(row_ids < valid_rows_last, sq, 0.0))
    else:
        _accumulate(sq)

    @pl.when(i == last)
    def _finalize():
        out_ref[0, 0] = jnp.sum(acc_ref[...])


def temperature_regularization_loss(temperature, weight=1.0,
                                    target_temperature=1.0,
                                    max_tile_rows=_DEFAULT_MAX_TILE_ROWS,
                                    small_n_threshold=_SMALL_N_THRESHOLD):
    """Pallas TPU implementation of TemperatureRegularizationLoss.forward."""
    if isinstance(temperature, (int, float)):
        x = jnp.asarray(temperature, dtype=jnp.float32)
    else:
        x = jnp.asarray(temperature)

    weight_f = jnp.asarray(weight, dtype=jnp.float32)
    target_f = jnp.asarray(target_temperature, dtype=jnp.float32)

    n = int(x.size)
    if n == 0:
        # torch's mse_loss over empty tensors yields NaN.
        return weight_f * jnp.float32(jnp.nan)

    flat = x.reshape(-1)                      # free bitcast
    inv_n = jnp.float32(1.0 / n)

    def _jnp_sum_sq(v):
        return jnp.sum((v.astype(jnp.float32) - target_f) ** 2)

    # Fast path: scalars / tiny temperature vectors — kernel launch overhead
    # dominates, and the fused XLA expression reads the data exactly once.
    if n < small_n_threshold:
        return weight_f * (_jnp_sum_sq(flat) * inv_n)

    # Sub-32-bit dtypes pack along sublanes: round the row tile to the
    # packing granule (8 f32 / 16 bf16 / 32 int8-fp8).
    granule = _SUBLANES * max(1, 4 // max(1, x.dtype.itemsize))
    rows_full = n // _LANES
    rem = n - rows_full * _LANES

    tile_cap = max(granule, (int(max_tile_rows) // granule) * granule)
    tile_rows = min(tile_cap, (rows_full // granule) * granule)
    if tile_rows == 0:
        # Not even one granule of full 128-lane rows: just use jnp.
        return weight_f * (_jnp_sum_sq(flat) * inv_n)

    n_main = rows_full * _LANES
    if rem == 0:
        main2d = flat.reshape(rows_full, _LANES)      # free bitcast, no copy
        tail_sum = jnp.float32(0.0)
    else:
        # TODO(synk): this prefix slice materializes one extra copy of the
        # aligned prefix; zero-copy handling would need 1-D/manual-DMA blocks.
        main2d = flat[:n_main].reshape(rows_full, _LANES)
        tail_sum = _jnp_sum_sq(flat[n_main:])         # < 128 elements

    grid_steps = pl.cdiv(rows_full, tile_rows)
    valid_rows_last = rows_full - (grid_steps - 1) * tile_rows
    mask_last = valid_rows_last != tile_rows

    kernel = functools.partial(
        _temp_reg_sum_kernel,
        tile_rows=tile_rows,
        valid_rows_last=valid_rows_last,
        mask_last=mask_last,
    )

    main_sum = pl.pallas_call(
        kernel,
        out_shape=jax.ShapeDtypeStruct((1, 1), jnp.float32),
        grid=(grid_steps,),
        in_specs=[
            pl.BlockSpec((tile_rows, _LANES), lambda i: (i, 0)),
            pl.BlockSpec((1, 1), lambda i: (0, 0), memory_space=pltpu.SMEM),
        ],
        out_specs=pl.BlockSpec((1, 1), lambda i: (0, 0),
                               memory_space=pltpu.SMEM),
        scratch_shapes=[pltpu.VMEM((_SUBLANES, _LANES), jnp.float32)],
        compiler_params=pltpu.CompilerParams(
            dimension_semantics=("arbitrary",)),
    )(main2d, target_f.reshape(1, 1))

    return weight_f * ((main_sum[0, 0] + tail_sum) * inv_n)


def _reference(temperature, weight=1.0, target_temperature=1.0):
    t = jnp.asarray(temperature, dtype=jnp.float32)
    tgt = jnp.asarray(target_temperature, dtype=jnp.float32)
    return jnp.asarray(weight, jnp.float32) * jnp.mean((t - tgt) ** 2)


if __name__ == "__main__":
    key = jax.random.PRNGKey(0)
    k1, k2, k3 = jax.random.split(key, 3)

    # 1) 128-aligned tensor -> kernel path, zero wrapper copies, single block.
    temps = 1.0 + 0.25 * jax.random.normal(k1, (4, 8, 64), dtype=jnp.float32)
    out1 = jax.block_until_ready(
        temperature_regularization_loss(temps, weight=0.5, target_temperature=1.0))
    ref1 = _reference(temps, weight=0.5, target_temperature=1.0)
    assert jnp.allclose(out1, ref1, rtol=1e-5, atol=1e-6), (out1, ref1)

    # 1b) Same input with traced weight / target (SMEM target operand path).
    out1b = jax.block_until_ready(
        temperature_regularization_loss(temps, weight=jnp.float32(0.5),
                                        target_temperature=jnp.float32(1.0)))
    assert jnp.allclose(out1b, ref1, rtol=1e-5, atol=1e-6), (out1b, ref1)

    # 2) Ragged 1-D vector + tiny tile -> multi-step grid, resident VMEM
    #    accumulator, last-block-only row mask, jnp sub-128 tail.
    temps_big = 1.0 + 0.5 * jax.random.normal(k2, (2500,), dtype=jnp.float32)
    out2 = jax.block_until_ready(
        temperature_regularization_loss(temps_big, weight=2.0,
                                        target_temperature=1.5,
                                        max_tile_rows=8))
    ref2 = _reference(temps_big, weight=2.0, target_temperature=1.5)
    assert jnp.allclose(out2, ref2, rtol=1e-5, atol=1e-6), (out2, ref2)

    # 3) bf16 input -> in-kernel cast, 16-row packing granule.
    temps_bf = (1.0 + 0.5 * jax.random.normal(k3, (64, 256),
                                              dtype=jnp.float32)).astype(jnp.bfloat16)
    out3 = jax.block_until_ready(
        temperature_regularization_loss(temps_bf, weight=1.0,
                                        target_temperature=1.0))
    ref3 = _reference(temps_bf, weight=1.0, target_temperature=1.0)
    assert jnp.allclose(out3, ref3, rtol=1e-4, atol=1e-6), (out3, ref3)

    # 4) Small tensor and python-float temperature -> jnp fast path.
    temps_small = 1.0 + 0.25 * jax.random.normal(k1, (4, 13), dtype=jnp.float32)
    out4 = jax.block_until_ready(
        temperature_regularization_loss(temps_small, weight=0.5,
                                        target_temperature=1.0))
    ref4 = _reference(temps_small, weight=0.5, target_temperature=1.0)
    assert jnp.allclose(out4, ref4, rtol=1e-6, atol=1e-6), (out4, ref4)

    out5 = jax.block_until_ready(
        temperature_regularization_loss(2.5, weight=1.0, target_temperature=1.0))
    ref5 = _reference(2.5, weight=1.0, target_temperature=1.0)
    assert jnp.allclose(out5, ref5, rtol=1e-6, atol=1e-6), (out5, ref5)

    print("KERNEL_OK")
</pallas_src>

<mosaic_0001>
module attributes {stable_mosaic.version = 11 : i64} {
  func.func @_temp_reg_sum_kernel(%arg0: i32, %arg1: memref<16x128xf32, #tpu.memory_space<vmem>>, %arg2: memref<1x1xf32, #tpu.memory_space<smem>>, %arg3: memref<1x1xf32, #tpu.memory_space<smem>>, %arg4: memref<8x128xf32, #tpu.memory_space<vmem>>) attributes {dimension_semantics = [#tpu.dimension_semantics<arbitrary>], iteration_bounds = array<i64: 1>, scalar_prefetch = 0 : i64, scratch_operands = 1 : i64, tpu.core_type = #tpu.core_type<tc>, window_params = [{transform_indices = @transform_0, window_bounds = array<i64: 16, 128>}, {transform_indices = @transform_1, window_bounds = array<i64: 1, 1>}, {transform_indices = @transform_2, window_bounds = array<i64: 1, 1>}]} {
    %c0_i32 = arith.constant 0 : i32
    %0 = arith.cmpi eq, %arg0, %c0_i32 : i32
    %1 = arith.extui %0 : i1 to i32
    %c0_i32_0 = arith.constant 0 : i32
    %2 = arith.cmpi ne, %1, %c0_i32_0 : i32
    scf.if %2 {
      %cst_10 = arith.constant 0.000000e+00 : f32
      %16 = vector.broadcast %cst_10 : f32 to vector<8x128xf32>
      %c0_11 = arith.constant 0 : index
      %c0_12 = arith.constant 0 : index
      %17 = vector.load %arg4[%c0_11, %c0_12] : memref<8x128xf32, #tpu.memory_space<vmem>>, vector<8x128xf32>
      tpu.vector_store %arg4[%c0_11, %c0_12], %16 {strides = array<i32>} : memref<8x128xf32, #tpu.memory_space<vmem>>, vector<8x128xf32>,
    } else {
    }
    %c0 = arith.constant 0 : index
    %c0_1 = arith.constant 0 : index
    %3 = vector.load %arg1[%c0, %c0_1] : memref<16x128xf32, #tpu.memory_space<vmem>>, vector<16x128xf32>
    %c0_2 = arith.constant 0 : index
    %c0_3 = arith.constant 0 : index
    %4 = memref.load %arg2[%c0_2, %c0_3] : memref<1x1xf32, #tpu.memory_space<smem>>
    %5 = vector.broadcast %4 : f32 to vector<16x128xf32>
    %6 = arith.subf %3, %5 : vector<16x128xf32>
    %7 = arith.mulf %6, %6 : vector<16x128xf32>
    %c0_4 = arith.constant 0 : index
    %c0_5 = arith.constant 0 : index
    %8 = vector.load %arg4[%c0_4, %c0_5] : memref<8x128xf32, #tpu.memory_space<vmem>>, vector<8x128xf32>
    %9 = vector.shape_cast %7 : vector<16x128xf32> to vector<2x8x128xf32>
    %cst = arith.constant dense<0.000000e+00> : vector<8x128xf32>
    %10 = vector.multi_reduction <add>, %9, %cst [0] : vector<2x8x128xf32> to vector<8x128xf32>
    %11 = arith.addf %8, %10 : vector<8x128xf32>
    %c0_6 = arith.constant 0 : index
    %c0_7 = arith.constant 0 : index
    %12 = vector.load %arg4[%c0_6, %c0_7] : memref<8x128xf32, #tpu.memory_space<vmem>>, vector<8x128xf32>
    tpu.vector_store %arg4[%c0_6, %c0_7], %11 {strides = array<i32>} : memref<8x128xf32, #tpu.memory_space<vmem>>, vector<8x128xf32>,
    %c0_i32_8 = arith.constant 0 : i32
    %13 = arith.cmpi eq, %arg0, %c0_i32_8 : i32
    %14 = arith.extui %13 : i1 to i32
    %c0_i32_9 = arith.constant 0 : i32
    %15 = arith.cmpi ne, %14, %c0_i32_9 : i32
    scf.if %15 {
      %c0_10 = arith.constant 0 : index
      %c0_11 = arith.constant 0 : index
      %16 = vector.load %arg4[%c0_10, %c0_11] : memref<8x128xf32, #tpu.memory_space<vmem>>, vector<8x128xf32>
      %17 = vector.shape_cast %16 : vector<8x128xf32> to vector<1x8x128xf32>
      %cst_12 = arith.constant dense<0.000000e+00> : vector<1xf32>
      %18 = vector.multi_reduction <add>, %17, %cst_12 [1, 2] : vector<1x8x128xf32> to vector<1xf32>
      %19 = vector.shape_cast %18 : vector<1xf32> to vector<1x1x1xf32>
      %20 = vector.extract %19[0, 0, 0] : f32 from vector<1x1x1xf32>
      %c0_13 = arith.constant 0 : index
      %c0_14 = arith.constant 0 : index
      %21 = memref.load %arg3[%c0_13, %c0_14] : memref<1x1xf32, #tpu.memory_space<smem>>
      memref.store %20, %arg3[%c0_13, %c0_14] : memref<1x1xf32, #tpu.memory_space<smem>>
    } else {
    }
    return
  }
  func.func @transform_0(%arg0: i32) -> (i32, i32) {
    %c0_i32 = arith.constant 0 : i32
    %c0_i32_0 = arith.constant 0 : i32
    return %arg0, %c0_i32 : i32, i32
  }
  func.func @transform_1(%arg0: i32) -> (i32, i32) {
    %c0_i32 = arith.constant 0 : i32
    %c0_i32_0 = arith.constant 0 : i32
    %c0_i32_1 = arith.constant 0 : i32
    return %c0_i32, %c0_i32_0 : i32, i32
  }
  func.func @transform_2(%arg0: i32) -> (i32, i32) {
    %c0_i32 = arith.constant 0 : i32
    %c0_i32_0 = arith.constant 0 : i32
    %c0_i32_1 = arith.constant 0 : i32
    return %c0_i32, %c0_i32_0 : i32, i32
  }
}

</mosaic_0001>

<bundles_post_ra>
// kernel: tpu_custom_call.1
= control target key start
LH: loop header
LB: loop body
LE: loop exit
PB: predicated region body
PF: predicated region fallthrough
CT: control target
= control target key end

     0   :  { %8 = vsyncpa [#allocation5], 0  ;;  %s161_s0 = inlined_call_operand.hbm [shape: f32[16,128], index: 0, kind: input, shape index: {}]   ;;  %s162_s1 = inlined_call_operand.<no memory space> [shape: f32[1,1], index: 1, kind: input, shape index: {}]   ;;  %s163_s2 = inlined_call_operand.hbm [shape: f32[1,1], index: 2, kind: output, shape index: {}]  }
   0x1   :  { %9 = vsyncpa [#allocation6], 0  ;;  %s115_s9 = smov [#allocation4]   ;;  %s79_s13 = scalar_lea.hbm %s161_s0, 256 }
   0x2   :  { %s15_s10 = sshll.u32 %s115_s9, 4  ;;  %p80_p0 = scmp.ne.s32.totalorder %s161_s0, %s79_s13  ;;  %s16_s10 = int_to_ptr.vmem [resolvable:$true] %s15_s10 }
   0x3   :  { %p83_p1 = scmp.lt.u32.totalorder %s79_s13, %s161_s0 }
   0x5   :  { %p85_p2 = pnand %p83_p1, %p80_p0 }
   0x7   :  { %88 = shalt.err (!%p85_p2)
}
   0x8   :  { %s89_s18 = scalar_lea.vmem %s16_s10, 256  ;;  %p94_p4 = scmp.lt.s32.totalorder %s16_s10, %s16_s10 }
   0x9   :  { %p90_p3 = scmp.ne.s32.totalorder %s16_s10, %s89_s18  ;;  %p95_p5 = scmp.lt.s32.totalorder %s89_s18, %s89_s18 }
   0xb   :  { %p96_p6 = por %p95_p5, %p94_p4 }
   0xd   :  { %p97_p7 = pnand %p96_p6, %p90_p3 }
   0xf   :  { %100 = shalt.err (!%p97_p7)
}
  0x10   :  { %s116_s19 = smov 128   ;;  %s117_s20 = smov 8  }
  0x11   :  { %21 = dma.hbm_to_vmem [thread:$0]  %s161_s0, 256, %s16_s10, [#allocation5], %s116_s19, %s116_s19, %s117_s20  }
  0x12   :  { %111 = dma.done.wait [#allocation5], 256  }
  0x13   :  { %112 = vsyncadd [#allocation5], 4294967040  ;;  %v35_v0 = vstv %s162_s1  ;;  %v32_v1 = vld [vmem:[#allocation4] sm:$0xff]  ;;  %v33_v2 = vld [vmem:[#allocation4 + $0x8] sm:$0xff]  ;;  %s101_s26 = scalar_lea.hbm %s163_s2, 16 }
  0x14   :  { %v36_v3 = vsub.f32 %v32_v1, %v35_v0  ;;  %v37_v4 = vsub.f32 %v33_v2, %v35_v0  ;;  %p102_p8 = scmp.ne.s32.totalorder %s163_s2, %s101_s26  ;;  %p105_p9 = scmp.lt.u32.totalorder %s101_s26, %s163_s2 }
  0x16   :  { %v38_v5 = vmul.f32 %v36_v3, %v36_v3  ;;  %v39_v6 = vmul.f32 %v37_v4, %v37_v4  ;;  %p107_p10 = pnand %p105_p9, %p102_p8 }
  0x18   :  { %v41_v7 = vadd.f32 %v39_v6, %v38_v5 }
  0x1a   :  { %48 = vadd.xlane.f32.xlu0 %v41_v7 }
  0xa7   :  { %v49_v8 = vpop.xlane.xlu0 %48 }
  0xa8   :  { %v50_v9 = vrot.slane %v49_v8, 4 }
  0xaa   :  { %v51_v10 = vadd.f32 %v50_v9, %v49_v8 }
  0xac   :  { %v52_v11 = vrot.slane %v51_v10, 2 }
  0xae   :  { %v53_v12 = vadd.f32 %v52_v11, %v51_v10 }
  0xb0   :  { %v54_v13 = vrot.slane %v53_v12, 1 }
  0xb2   :  { %v55_v14 = vadd.f32 %v54_v13, %v53_v12 }
  0xb4   :  { %73 = vpush %v55_v14 }
  0xe5   :  { %s74_s0 = spop %73 }
  0xe6   :  { %58 = sst [smem:[#allocation7]] %s74_s0 }
  0xe7   :  { %110 = shalt.err (!%p107_p10)
}
  0xe8   :  { %s118_s3 = smov [#allocation7]  }
  0xe9   :  { %66 = dma.smem_to_hbm %s118_s3, 16, %s163_s2, [#allocation6]  }
  0xea   :  { %113 = dma.done.wait [#allocation6], 16  }
  0xeb   :  { %114 = vsyncadd [#allocation6], 4294967280 }
  0xec   :  { %70 = sfence }
  0xed   :  { %71 = vsyncpa [#allocation5], 1 }
  0xee   :  { %72 = vsyncpa [#allocation6], 1 }

</bundles_post_ra>
